<compile_context>
chip_gen: v7x
topology: tpu7x:2x2x1
jax: 0.10.0
libtpu: 0.0.40
codegen_flags: <defaults>
</compile_context>

<pallas_src>
import functools

import jax
import jax.numpy as jnp
from jax.experimental import pallas as pl
from jax.experimental.pallas import tpu as pltpu

NLCFS = 129
PHYSICS_LS = 64
HIDDEN = 32
OUT = NLCFS * 2             # 258
DEFAULT_BLOCK_ROWS = 1024   # batch tile (rows per grid step)


def _swish(x, beta):
    # x * sigmoid(beta * x), computed in f32 (EUP handles the sigmoid).
    return x * jax.nn.sigmoid(beta * x)


def lcfs_kernel(ph_ref, w1_ref, b1_ref, w2_ref, b2_ref, w3_ref, b3_ref,
                beta_ref, out_ref):
    # ph_ref: (TB, 64) f32; w*/b*: f32 (VMEM-resident); beta_ref: (3,) f32 SMEM.
    x = ph_ref[...]

    h1 = jnp.dot(x, w1_ref[...], preferred_element_type=jnp.float32)  # (TB,32)
    h1 = _swish(h1 + b1_ref[...], beta_ref[0])

    h2 = jnp.dot(h1, w2_ref[...], preferred_element_type=jnp.float32)  # (TB,32)
    h2 = _swish(h2 + b2_ref[...], beta_ref[1])

    h3 = jnp.dot(h2, w3_ref[...], preferred_element_type=jnp.float32)  # (TB,258)
    h3 = _swish(h3 + b3_ref[...], beta_ref[2])

    out_ref[...] = h3.astype(out_ref.dtype)


def _round_up(x, m):
    return ((x + m - 1) // m) * m


@functools.partial(jax.jit, static_argnames=("block_rows",))
def lcfs_head(ph, params, block_rows=DEFAULT_BLOCK_ROWS):
    """ph: (B, 64) float32 -> (B, 258) float32."""
    w1, b1, w2, b2, w3, b3, betas = params
    B = ph.shape[0]

    # Batch tile: multiple of 8 (sublane), capped at block_rows; pad B so every
    # grid step is an identical full tile (no ragged blocks).
    tb = _round_up(min(block_rows, _round_up(B, 8)), 8)
    b_pad = _round_up(B, tb)

    ph_f = ph.astype(jnp.float32)
    if b_pad != B:
        ph_f = jnp.pad(ph_f, ((0, b_pad - B), (0, 0)))

    f32 = lambda a: a.astype(jnp.float32)
    const2 = lambda i: (0, 0)   # weights/biases: same block every step (resident)

    out = pl.pallas_call(
        lcfs_kernel,
        out_shape=jax.ShapeDtypeStruct((b_pad, OUT), jnp.float32),
        grid=(b_pad // tb,),
        in_specs=[
            pl.BlockSpec((tb, PHYSICS_LS), lambda i: (i, 0)),   # ph (batch-tiled)
            pl.BlockSpec((PHYSICS_LS, HIDDEN), const2),         # w1
            pl.BlockSpec((1, HIDDEN), const2),                  # b1
            pl.BlockSpec((HIDDEN, HIDDEN), const2),             # w2
            pl.BlockSpec((1, HIDDEN), const2),                  # b2
            pl.BlockSpec((HIDDEN, OUT), const2),                # w3
            pl.BlockSpec((1, OUT), const2),                     # b3
            pl.BlockSpec(memory_space=pltpu.MemorySpace.SMEM),  # betas (3,)
        ],
        out_specs=pl.BlockSpec((tb, OUT), lambda i: (i, 0)),
        compiler_params=pltpu.CompilerParams(
            dimension_semantics=("parallel",)),
    )(ph_f, f32(w1), f32(b1), f32(w2), f32(b2), f32(w3), f32(b3), f32(betas))

    if b_pad != B:
        out = out[:B]
    return out


def init_params(key):
    """Deterministic synthetic parameters matching the PyTorch module shapes."""
    ks = jax.random.split(key, 6)

    def linear(kw, kb, fan_in, fan_out):
        # uniform(-1/sqrt(fan_in), 1/sqrt(fan_in)), like torch.nn.Linear default
        bound = 1.0 / float(fan_in) ** 0.5
        w = jax.random.uniform(kw, (fan_in, fan_out), jnp.float32, -bound, bound)
        b = jax.random.uniform(kb, (1, fan_out), jnp.float32, -bound, bound)
        return w, b

    w1, b1 = linear(ks[0], ks[1], PHYSICS_LS, HIDDEN)
    w2, b2 = linear(ks[2], ks[3], HIDDEN, HIDDEN)
    w3, b3 = linear(ks[4], ks[5], HIDDEN, OUT)
    betas = jnp.ones((3,), jnp.float32)  # ActF betas initialized to 1.0
    return (w1, b1, w2, b2, w3, b3, betas)


@jax.jit
def reference_forward(ph, params):
    """Plain-JAX f32 reference mirroring the PyTorch module."""
    w1, b1, w2, b2, w3, b3, betas = params
    h = _swish(ph @ w1 + b1, betas[0])
    h = _swish(h @ w2 + b2, betas[1])
    h = _swish(h @ w3 + b3, betas[2])
    return h


if __name__ == "__main__":
    key = jax.random.PRNGKey(0)
    k_params, k_x = jax.random.split(key)

    params = init_params(k_params)

    ok = True
    for B in (16, 5):   # 5 exercises the row-padding / slice-back path
        ph = jax.random.normal(jax.random.fold_in(k_x, B), (B, PHYSICS_LS),
                               jnp.float32)
        out = jax.block_until_ready(lcfs_head(ph, params))
        ref = jax.block_until_ready(reference_forward(ph, params))
        assert out.shape == (B, OUT)
        err = float(jnp.max(jnp.abs(out - ref)))
        # Both paths use TPU MXU matmuls with f32 accumulation; tolerance covers
        # default-precision (bf16-operand) rounding differences.
        ok = ok and (err < 1e-2)
        assert err < 1e-2, f"B={B}: max abs err {err}"

    if ok:
        print("KERNEL_OK")
</pallas_src>

<mosaic_0001>
module attributes {stable_mosaic.version = 11 : i64} {
  func.func @lcfs_kernel(%arg0: i32, %arg1: memref<16x64xf32, #tpu.memory_space<vmem>>, %arg2: memref<64x32xf32, #tpu.memory_space<vmem>>, %arg3: memref<1x32xf32, #tpu.memory_space<vmem>>, %arg4: memref<32x32xf32, #tpu.memory_space<vmem>>, %arg5: memref<1x32xf32, #tpu.memory_space<vmem>>, %arg6: memref<32x258xf32, #tpu.memory_space<vmem>>, %arg7: memref<1x258xf32, #tpu.memory_space<vmem>>, %arg8: memref<3xf32, #tpu.memory_space<smem>>, %arg9: memref<16x258xf32, #tpu.memory_space<vmem>>) attributes {dimension_semantics = [#tpu.dimension_semantics<parallel>], iteration_bounds = array<i64: 1>, scalar_prefetch = 0 : i64, scratch_operands = 0 : i64, tpu.core_type = #tpu.core_type<tc>, window_params = [{transform_indices = @transform_0, window_bounds = array<i64: 16, 64>}, {pipeline_mode = #tpu.pipeline_mode<synchronous>, transform_indices = @transform_1, window_bounds = array<i64: 64, 32>}, {pipeline_mode = #tpu.pipeline_mode<synchronous>, transform_indices = @transform_2, window_bounds = array<i64: 1, 32>}, {pipeline_mode = #tpu.pipeline_mode<synchronous>, transform_indices = @transform_3, window_bounds = array<i64: 32, 32>}, {pipeline_mode = #tpu.pipeline_mode<synchronous>, transform_indices = @transform_4, window_bounds = array<i64: 1, 32>}, {pipeline_mode = #tpu.pipeline_mode<synchronous>, transform_indices = @transform_5, window_bounds = array<i64: 32, 258>}, {pipeline_mode = #tpu.pipeline_mode<synchronous>, transform_indices = @transform_6, window_bounds = array<i64: 1, 258>}, {transform_indices = @transform_7, window_bounds = array<i64: 3>}, {transform_indices = @transform_8, window_bounds = array<i64: 16, 258>}]} {
    %c0 = arith.constant 0 : index
    %c0_0 = arith.constant 0 : index
    %0 = vector.load %arg1[%c0, %c0_0] : memref<16x64xf32, #tpu.memory_space<vmem>>, vector<16x64xf32>
    %c0_1 = arith.constant 0 : index
    %c0_2 = arith.constant 0 : index
    %1 = vector.load %arg2[%c0_1, %c0_2] : memref<64x32xf32, #tpu.memory_space<vmem>>, vector<64x32xf32>
    %cst = arith.constant dense<0.000000e+00> : vector<16x32xf32>
    %2 = tpu.matmul %0, %1, %cst {dimension_numbers = #tpu.dot_dimension_numbers<[1], [0], [0], [1], [0, 0, 1, 1], [], []>} : vector<16x64xf32>, vector<64x32xf32>, vector<16x32xf32> -> vector<16x32xf32>
    %c0_3 = arith.constant 0 : index
    %c0_4 = arith.constant 0 : index
    %3 = vector.load %arg3[%c0_3, %c0_4] : memref<1x32xf32, #tpu.memory_space<vmem>>, vector<1x32xf32>
    %4 = vector.broadcast %3 : vector<1x32xf32> to vector<16x32xf32>
    %5 = arith.addf %2, %4 : vector<16x32xf32>
    %c0_5 = arith.constant 0 : index
    %6 = memref.load %arg8[%c0_5] : memref<3xf32, #tpu.memory_space<smem>>
    %7 = vector.broadcast %6 : f32 to vector<16x32xf32>
    %8 = arith.mulf %7, %5 : vector<16x32xf32>
    %9 = arith.negf %8 : vector<16x32xf32>
    %10 = math.exp %9 : vector<16x32xf32>
    %cst_6 = arith.constant 1.000000e+00 : f32
    %11 = vector.broadcast %cst_6 : f32 to vector<16x32xf32>
    %12 = arith.addf %11, %10 : vector<16x32xf32>
    %13 = arith.divf %11, %12 : vector<16x32xf32>
    %14 = arith.mulf %5, %13 : vector<16x32xf32>
    %c0_7 = arith.constant 0 : index
    %c0_8 = arith.constant 0 : index
    %15 = vector.load %arg4[%c0_7, %c0_8] : memref<32x32xf32, #tpu.memory_space<vmem>>, vector<32x32xf32>
    %cst_9 = arith.constant dense<0.000000e+00> : vector<16x32xf32>
    %16 = tpu.matmul %14, %15, %cst_9 {dimension_numbers = #tpu.dot_dimension_numbers<[1], [0], [0], [1], [0, 0, 1, 1], [], []>} : vector<16x32xf32>, vector<32x32xf32>, vector<16x32xf32> -> vector<16x32xf32>
    %c0_10 = arith.constant 0 : index
    %c0_11 = arith.constant 0 : index
    %17 = vector.load %arg5[%c0_10, %c0_11] : memref<1x32xf32, #tpu.memory_space<vmem>>, vector<1x32xf32>
    %18 = vector.broadcast %17 : vector<1x32xf32> to vector<16x32xf32>
    %19 = arith.addf %16, %18 : vector<16x32xf32>
    %c1 = arith.constant 1 : index
    %20 = memref.load %arg8[%c1] : memref<3xf32, #tpu.memory_space<smem>>
    %21 = vector.broadcast %20 : f32 to vector<16x32xf32>
    %22 = arith.mulf %21, %19 : vector<16x32xf32>
    %23 = arith.negf %22 : vector<16x32xf32>
    %24 = math.exp %23 : vector<16x32xf32>
    %cst_12 = arith.constant 1.000000e+00 : f32
    %25 = vector.broadcast %cst_12 : f32 to vector<16x32xf32>
    %26 = arith.addf %25, %24 : vector<16x32xf32>
    %27 = arith.divf %25, %26 : vector<16x32xf32>
    %28 = arith.mulf %19, %27 : vector<16x32xf32>
    %c0_13 = arith.constant 0 : index
    %c0_14 = arith.constant 0 : index
    %29 = vector.load %arg6[%c0_13, %c0_14] : memref<32x258xf32, #tpu.memory_space<vmem>>, vector<32x258xf32>
    %cst_15 = arith.constant dense<0.000000e+00> : vector<16x258xf32>
    %30 = tpu.matmul %28, %29, %cst_15 {dimension_numbers = #tpu.dot_dimension_numbers<[1], [0], [0], [1], [0, 0, 1, 1], [], []>} : vector<16x32xf32>, vector<32x258xf32>, vector<16x258xf32> -> vector<16x258xf32>
    %c0_16 = arith.constant 0 : index
    %c0_17 = arith.constant 0 : index
    %31 = vector.load %arg7[%c0_16, %c0_17] : memref<1x258xf32, #tpu.memory_space<vmem>>, vector<1x258xf32>
    %32 = vector.broadcast %31 : vector<1x258xf32> to vector<16x258xf32>
    %33 = arith.addf %30, %32 : vector<16x258xf32>
    %c2 = arith.constant 2 : index
    %34 = memref.load %arg8[%c2] : memref<3xf32, #tpu.memory_space<smem>>
    %35 = vector.broadcast %34 : f32 to vector<16x258xf32>
    %36 = arith.mulf %35, %33 : vector<16x258xf32>
    %37 = arith.negf %36 : vector<16x258xf32>
    %38 = math.exp %37 : vector<16x258xf32>
    %cst_18 = arith.constant 1.000000e+00 : f32
    %39 = vector.broadcast %cst_18 : f32 to vector<16x258xf32>
    %40 = arith.addf %39, %38 : vector<16x258xf32>
    %41 = arith.divf %39, %40 : vector<16x258xf32>
    %42 = arith.mulf %33, %41 : vector<16x258xf32>
    %c0_19 = arith.constant 0 : index
    %c0_20 = arith.constant 0 : index
    %43 = vector.load %arg9[%c0_19, %c0_20] : memref<16x258xf32, #tpu.memory_space<vmem>>, vector<16x258xf32>
    tpu.vector_store %arg9[%c0_19, %c0_20], %42 {strides = array<i32>} : memref<16x258xf32, #tpu.memory_space<vmem>>, vector<16x258xf32>,
    return
  }
  func.func @transform_0(%arg0: i32) -> (i32, i32) {
    %c0_i32 = arith.constant 0 : i32
    %c0_i32_0 = arith.constant 0 : i32
    return %arg0, %c0_i32 : i32, i32
  }
  func.func @transform_1(%arg0: i32) -> (i32, i32) {
    %c0_i32 = arith.constant 0 : i32
    %c0_i32_0 = arith.constant 0 : i32
    %c0_i32_1 = arith.constant 0 : i32
    return %c0_i32, %c0_i32_0 : i32, i32
  }
  func.func @transform_2(%arg0: i32) -> (i32, i32) {
    %c0_i32 = arith.constant 0 : i32
    %c0_i32_0 = arith.constant 0 : i32
    %c0_i32_1 = arith.constant 0 : i32
    return %c0_i32, %c0_i32_0 : i32, i32
  }
  func.func @transform_3(%arg0: i32) -> (i32, i32) {
    %c0_i32 = arith.constant 0 : i32
    %c0_i32_0 = arith.constant 0 : i32
    %c0_i32_1 = arith.constant 0 : i32
    return %c0_i32, %c0_i32_0 : i32, i32
  }
  func.func @transform_4(%arg0: i32) -> (i32, i32) {
    %c0_i32 = arith.constant 0 : i32
    %c0_i32_0 = arith.constant 0 : i32
    %c0_i32_1 = arith.constant 0 : i32
    return %c0_i32, %c0_i32_0 : i32, i32
  }
  func.func @transform_5(%arg0: i32) -> (i32, i32) {
    %c0_i32 = arith.constant 0 : i32
    %c0_i32_0 = arith.constant 0 : i32
    %c0_i32_1 = arith.constant 0 : i32
    return %c0_i32, %c0_i32_0 : i32, i32
  }
  func.func @transform_6(%arg0: i32) -> (i32, i32) {
    %c0_i32 = arith.constant 0 : i32
    %c0_i32_0 = arith.constant 0 : i32
    %c0_i32_1 = arith.constant 0 : i32
    return %c0_i32, %c0_i32_0 : i32, i32
  }
  func.func @transform_7(%arg0: i32) -> i32 {
    %c0_i32 = arith.constant 0 : i32
    %c0_i32_0 = arith.constant 0 : i32
    return %c0_i32 : i32
  }
  func.func @transform_8(%arg0: i32) -> (i32, i32) {
    %c0_i32 = arith.constant 0 : i32
    %c0_i32_0 = arith.constant 0 : i32
    return %arg0, %c0_i32 : i32, i32
  }
}

</mosaic_0001>

<bundles_post_ra>
// kernel: lcfs_head.1
= control target key start
LH: loop header
LB: loop body
LE: loop exit
PB: predicated region body
PF: predicated region fallthrough
CT: control target
= control target key end

     0   :  { %13 = vsyncpa [#allocation3], 0  ;;  %s945_s0 = inlined_call_operand.vmem [shape: f32[16,64], index: 0, kind: input, shape index: {}]   ;;  %s946_s1 = inlined_call_operand.vmem [shape: f32[64,32], index: 1, kind: input, shape index: {}]   ;;  %s947_s2 = inlined_call_operand.vmem [shape: f32[1,32], index: 2, kind: input, shape index: {}]   ;;  %s948_s3 = inlined_call_operand.hbm [shape: f32[32,32], index: 3, kind: input, shape index: {}]   ;;  %s949_s4 = inlined_call_operand.vmem [shape: f32[1,32], index: 4, kind: input, shape index: {}]   ;;  %s950_s5 = inlined_call_operand.vmem [shape: f32[32,258], index: 5, kind: input, shape index: {}]   ;;  %s951_s6 = inlined_call_operand.vmem [shape: f32[1,258], index: 6, kind: input, shape index: {}]   ;;  %s952_s7 = inlined_call_operand.vmem [shape: f32[3], index: 7, kind: input, shape index: {}]   ;;  %s953_s8 = inlined_call_operand.hbm [shape: f32[16,258], index: 8, kind: output, shape index: {}]  }
   0x1   :  { %14 = vsyncpa [#allocation5], 0 }
   0x2   :  { %15 = vsyncpa [#allocation4], 0  ;;  %s782_s27 = smov [#allocation2]   ;;  %s46_s9 = sshll.u32 %s952_s7, 4  ;;  %s47_s9 = int_to_ptr.vmem [resolvable:$true] %s46_s9 }
   0x3   :  { %s27_s28 = sshll.u32 %s782_s27, 4  ;;  %s720_s12 = scalar_lea.hbm %s948_s3, 512  ;;  %s28_s28 = int_to_ptr.vmem [resolvable:$true] %s27_s28 }
   0x4   :  { %p721_p0 = scmp.ne.s32.totalorder %s948_s3, %s720_s12  ;;  %p724_p1 = scmp.lt.u32.totalorder %s720_s12, %s948_s3 }
   0x6   :  { %p726_p2 = pnand %p724_p1, %p721_p0 }
   0x8   :  { %729 = shalt.err (!%p726_p2)
}
   0x9   :  { %s730_s17 = scalar_lea.vmem %s28_s28, 512  ;;  %p735_p4 = scmp.lt.s32.totalorder %s28_s28, %s28_s28 }
   0xa   :  { %p731_p3 = scmp.ne.s32.totalorder %s28_s28, %s730_s17  ;;  %p736_p5 = scmp.lt.s32.totalorder %s730_s17, %s730_s17 }
   0xc   :  { %p737_p6 = por %p736_p5, %p735_p4 }
   0xe   :  { %p738_p7 = pnand %p737_p6, %p731_p3 }
  0x10   :  { %741 = shalt.err (!%p738_p7)
}
  0x11   :  { %s783_s7 = smov 128   ;;  %s784_s18 = smov 8  }
  0x12   :  { %33 = dma.hbm_to_vmem [thread:$0]  %s948_s3, 512, %s28_s28, [#allocation3], %s783_s7, %s783_s7, %s784_s18  }
  0x13   :  { %s742_s21 = scalar_lea.vmem %s47_s9, 16  ;;  %p747_p9 = scmp.lt.s32.totalorder %s47_s9, %s47_s9 }
  0x14   :  { %p743_p8 = scmp.ne.s32.totalorder %s47_s9, %s742_s21  ;;  %p748_p10 = scmp.lt.s32.totalorder %s742_s21, %s742_s21 }
  0x16   :  { %p749_p11 = por %p748_p10, %p747_p9 }
  0x18   :  { %p750_p12 = pnand %p749_p11, %p743_p8 }
  0x1a   :  { %753 = shalt.err (!%p750_p12)
}
  0x1b   :  { %s785_s22 = smov [#allocation6]  }
  0x1c   :  { %49 = dma.vmem_to_smem %s47_s9, 16, %s785_s22, [#allocation5]  }
  0x1d   :  { %776 = dma.done.wait [#allocation3], 512  }
  0x1e   :  { %777 = vsyncadd [#allocation3], 4294966784 }
  0x1f   :  { %778 = dma.done.wait [#allocation5], 16  }
  0x20   :  { %779 = vsyncadd [#allocation5], 4294967280 }
  0x21   :  { %56 = sfence }
  0x22   :  { %v59_v0 = vld [vmem:[%s946_s1] sm:$0xff]  ;;  %v60_v1 = vld [vmem:[%s946_s1 + $0x8] sm:$0xff]  ;;  %v61_v2 = vld [vmem:[%s946_s1 + $0x10] sm:$0xff]  ;;  %vm74_vm0 = vcmask 523264   ;;  %vm185_vm1 = vcmask 261120   ;;  %v786_v56 = vmov 0.0  }
  0x23   :  { %v632_v3 = vpack.c.bf16 %v60_v1, %v59_v0  ;;  %v62_v4 = vld [vmem:[%s946_s1 + $0x18] sm:$0xff]  ;;  %v63_v6 = vld [vmem:[%s946_s1 + $0x20] sm:$0xff]  ;;  %v64_v7 = vld [vmem:[%s946_s1 + $0x28] sm:$0xff]  ;;  %vm524_vm2 = vcmask 15360  }
  0x24   :  { %v636_v5 = vpack.c.bf16 %v62_v4, %v61_v2  ;;  %v57_v8 = vld [vmem:[%s945_s0] sm:$0xff]  ;;  %v640_v9 = vpack.c.bf16 %v64_v7, %v63_v6  ;;  %v65_v10 = vld [vmem:[%s946_s1 + $0x30] sm:$0xff]  ;;  %v66_v11 = vld [vmem:[%s946_s1 + $0x38] sm:$0xff]  ;;  %s156_s1 = sld [smem:[#allocation6]] }
  0x25   :  { %633 = vmatprep.subr.bf16.mxu0 %v632_v3  ;;  %607 = vmatprep.mubr.msk.f32.mxu0 %vm74_vm0, %v57_v8  ;;  %v644_v12 = vpack.c.bf16 %v66_v11, %v65_v10  ;;  %v58_v13 = vld [vmem:[%s945_s0 + $0x8] sm:$0xff]  ;;  %v174_v14 = vld [vmem:[#allocation2] sm:$0xff]  ;;  %v176_v17 = vld [vmem:[#allocation2 + $0x10] sm:$0xff]  ;;  %v299_v11 = vlaneseq }
  0x26   :  { %635 = vmatpush3.bf16.msra.mxu0 %v632_v3  ;;  %v175_v15 = vld [vmem:[#allocation2 + $0x8] sm:$0xff]  ;;  %v177_v18 = vld [vmem:[#allocation2 + $0x18] sm:$0xff]  ;;  %v547_v20 = vld [vmem:[%s947_s2] ss:$0 sm:$0xff] }
  0x27   :  { %637 = vmatprep.subr.bf16.mxu0 %v636_v5  ;;  %v648_v16 = vpack.c.bf16 %v175_v15, %v174_v14  ;;  %v652_v19 = vpack.c.bf16 %v177_v18, %v176_v17  ;;  %v286_v38 = vld [vmem:[%s950_s5 + $0x8] sm:$0xff]  ;;  %v289_v39 = vld [vmem:[%s950_s5 + $0x20] sm:$0xff]  ;;  %v288_v42 = vld [vmem:[%s950_s5 + $0x18] sm:$0xff] }
  0x28   :  { %v656_v40 = vpack.c.bf16 %v289_v39, %v286_v38  ;;  %v285_v41 = vld [vmem:[%s950_s5] sm:$0xff]  ;;  %v287_v43 = vld [vmem:[%s950_s5 + $0x10] sm:$0xff]  ;;  %v290_v45 = vld [vmem:[%s950_s5 + $0x28] sm:$0xff] }
  0x29   :  { %649 = vmatprep.subr.bf16.mxu1 %v648_v16  ;;  %v658_v44 = vpack.c.bf16 %v288_v42, %v285_v41  ;;  %v664_v46 = vpack.c.bf16 %v290_v45, %v287_v43  ;;  %v292_v47 = vld [vmem:[%s950_s5 + $0x38] sm:$0xff]  ;;  %v295_v48 = vld [vmem:[%s950_s5 + $0x50] sm:$0xff]  ;;  %v294_v51 = vld [vmem:[%s950_s5 + $0x48] sm:$0xff] }
  0x2a   :  { %639 = vmatpush3.bf16.msra.mxu0 %v636_v5  ;;  %651 = vmatpush3.bf16.msra.mxu1 %v648_v16  ;;  %v157_v22 = vstv %s156_s1  ;;  %v660_v49 = vpack.c.bf16 %v295_v48, %v292_v47  ;;  %v291_v50 = vld [vmem:[%s950_s5 + $0x30] sm:$0xff]  ;;  %v293_v52 = vld [vmem:[%s950_s5 + $0x40] sm:$0xff]  ;;  %v296_v54 = vld [vmem:[%s950_s5 + $0x58] sm:$0xff]  ;;  %s555_s1 = sld [smem:[#allocation6 + $0x1]] }
  0x2b   :  { %641 = vmatprep.subr.bf16.mxu0 %v640_v9  ;;  %653 = vmatprep.subr.bf16.mxu1 %v652_v19  ;;  %v662_v53 = vpack.c.bf16 %v294_v51, %v291_v50  ;;  %v668_v55 = vpack.c.bf16 %v296_v54, %v293_v52  ;;  %v552_v57 = vld [vmem:[%s949_s4] ss:$0 sm:$0xff]  ;;  %s562_s4 = sld [smem:[#allocation6 + $0x2]] }
  0x2c   :  { %v297_v14 = vld [vmem:[%s951_s6] sm:$0x7]  ;;  %s787_s6 = smov [#allocation7]  }
  0x2d   :  { %s534_s2 = sshll.u32 %s787_s6, 4  ;;  %s535_s2 = int_to_ptr.vmem [resolvable:$true] %s534_s2 }
  0x2e   :  { %643 = vmatpush3.bf16.msra.mxu0 %v640_v9  ;;  %655 = vmatpush3.bf16.msra.mxu1 %v652_v19  ;;  %s754_s21 = scalar_lea.vmem %s535_s2, 768  ;;  %p759_p0 = scmp.lt.s32.totalorder %s535_s2, %s535_s2 }
  0x2f   :  { %645 = vmatprep.subr.bf16.mxu0 %v644_v12  ;;  %657 = vmatprep.subr.bf16.mxu1 %v656_v40  ;;  %p755_p13 = scmp.ne.s32.totalorder %s535_s2, %s754_s21  ;;  %p760_p1 = scmp.lt.s32.totalorder %s754_s21, %s754_s21 }
  0x30   :  { %v268_v59 = vstv %s555_s1 }
  0x31   :  { %p761_p2 = por %p760_p1, %p759_p0 }
  0x32   :  { %647 = vmatpush3.bf16.msra.mxu0 %v644_v12  ;;  %v300_v12 = vshrl.u32 %v299_v11, 7 }
  0x33   :  { %665 = vmatprep.subr.bf16.mxu0 %v664_v46  ;;  %p762_p3 = pnand %p761_p2, %p755_p13 }
  0x34   :  { %v305_v15 = vsub.s32 1, %v300_v12  ;;  %v309_v16 = vsub.s32 2, %v300_v12 }
  0x35   :  { %608 = vmatmul.mubr.msk.f32.vlgmr.msra.gmra.mrb[0].mxu0 %vm74_vm0, %v58_v13  ;;  %v301_v13 = vsub.s32 0, %v300_v12 }
  0x36   :  { %667 = vmatpush3.bf16.msra.mxu0 %v664_v46  ;;  %v306_v18 = vrot.slane %v297_v14, %v305_v15  ;;  %v310_v19 = vrot.slane %v297_v14, %v309_v16 }
  0x37   :  { %669 = vmatprep.subr.bf16.mxu0 %v668_v55  ;;  %v302_v17 = vrot.slane %v297_v14, %v301_v13 }
  0x3a   :  { %671 = vmatpush3.bf16.msra.mxu0 %v668_v55 }
 0x108   :  { %v609_v21 = vpop.f32.mrb[0].mxu0 }
 0x109   :  { %v153_v23 = vadd.f32 %v609_v21, %v547_v20  ;;  %v147_v24 = vpop.f32.mrb[1].mxu0  ;;  %v473_v21 = vstv %s562_s4 }
 0x10a   :  { %v148_v25 = vadd.f32 %v547_v20, %v147_v24 }
 0x10b   :  { %v159_v26 = vmul.f32 %v157_v22, %v153_v23 }
 0x10c   :  { %v158_v27 = vmul.f32 %v157_v22, %v148_v25 }
 0x10d   :  { %v551_v28 = vmul.f32 -1.442695, %v159_v26 }
 0x10e   :  { %v550_v29 = vmul.f32 -1.442695, %v158_v27 }
 0x10f   :  { %680 = vpow2.f32 %v551_v28 }
 0x110   :  { %682 = vpow2.f32 %v550_v29 }
 0x119   :  { %v681_v30 = vpop.eup %680 }
 0x11a   :  { %v683_v31 = vpop.eup %682  ;;  %v167_v32 = vadd.f32 1.0, %v681_v30 }
 0x11b   :  { %v166_v33 = vadd.f32 1.0, %v683_v31 }
 0x11c   :  { %684 = vrcp.f32 %v167_v32 }
 0x11d   :  { %686 = vrcp.f32 %v166_v33 }
 0x126   :  { %v685_v34 = vpop.eup %684 }
 0x127   :  { %v687_v35 = vpop.eup %686  ;;  %v173_v37 = vmul.f32 %v685_v34, %v153_v23 }
 0x128   :  { %v172_v36 = vmul.f32 %v687_v35, %v148_v25 }
 0x12a   :  { %618 = vmatprep.mubr.msk.f32.mxu1 %vm185_vm1, %v172_v36 }
 0x12b   :  { %619 = vmatmul.mubr.msk.f32.vlgmr.msra.gmra.mrb[0].mxu1 %vm185_vm1, %v173_v37 }
 0x12c   :  { %659 = vmatpush1.bf16.msra.mxu1 %v658_v44  ;;  %384 = vmatprep.mubr.f32.mxu1 %v786_v56 }
 0x12d   :  { %661 = vmatprep.subr.bf16.mxu1 %v660_v49 }
 0x130   :  { %663 = vmatpush1.bf16.msra.mxu1 %v662_v53 }
 0x1fe   :  { %v620_v58 = vpop.f32.mrb[0].mxu1 }
 0x1ff   :  { %v264_v60 = vadd.f32 %v620_v58, %v552_v57  ;;  %v258_v61 = vpop.f32.mrb[1].mxu1 }
 0x200   :  { %v259_v62 = vadd.f32 %v552_v57, %v258_v61 }
 0x201   :  { %v270_v63 = vmul.f32 %v268_v59, %v264_v60 }
 0x202   :  { %v269_v0 = vmul.f32 %v268_v59, %v259_v62 }
 0x203   :  { %v557_v1 = vmul.f32 -1.442695, %v270_v63 }
 0x204   :  { %v556_v2 = vmul.f32 -1.442695, %v269_v0 }
 0x205   :  { %688 = vpow2.f32 %v557_v1 }
 0x206   :  { %690 = vpow2.f32 %v556_v2 }
 0x20f   :  { %v689_v3 = vpop.eup %688 }
 0x210   :  { %v691_v4 = vpop.eup %690  ;;  %v278_v5 = vadd.f32 1.0, %v689_v3 }
 0x211   :  { %v277_v6 = vadd.f32 1.0, %v691_v4 }
 0x212   :  { %692 = vrcp.f32 %v278_v5 }
 0x213   :  { %694 = vrcp.f32 %v277_v6 }
 0x21c   :  { %v693_v7 = vpop.eup %692 }
 0x21d   :  { %v695_v8 = vpop.eup %694  ;;  %v284_v10 = vmul.f32 %v693_v7, %v264_v60 }
 0x21e   :  { %v283_v9 = vmul.f32 %v695_v8, %v259_v62 }
 0x220   :  { %558 = vmatmul.mubr.msk.f32.vlgmr.msra.gmra.mrb[2].mxu1 %vm185_vm1, %v283_v9  ;;  %629 = vmatprep.mubr.msk.f32.mxu0 %vm185_vm1, %v283_v9 }
 0x221   :  { %630 = vmatmul.mubr.msk.f32.vlgmr.msra.gmra.mrb[2].mxu0 %vm185_vm1, %v284_v10  ;;  %390 = vmatprep.mubr.f32.mxu1 %v786_v56 }
 0x224   :  { %559 = vmatmul.mubr.msk.f32.gmra.mrb[4].mxu1 %vm185_vm1, %v284_v10 }
 0x2f3   :  { %v386_v20 = vpop.f32.mrb[2].mxu1 }
 0x2f4   :  { %v387_v22 = vadd.f32 %v386_v20, %v302_v17  ;;  %v388_v23 = vpop.f32.mrb[3].mxu1  ;;  %v631_v24 = vpop.f32.mrb[2].mxu0 }
 0x2f5   :  { %v389_v25 = vadd.f32 %v388_v23, %v306_v18  ;;  %v469_v26 = vadd.f32 %v631_v24, %v310_v19  ;;  %v463_v27 = vpop.f32.mrb[3].mxu0 }
 0x2f6   :  { %v474_v28 = vmul.f32 %v473_v21, %v387_v22  ;;  %v464_v29 = vadd.f32 %v463_v27, %v310_v19 }
 0x2f7   :  { %v475_v30 = vmul.f32 %v473_v21, %v389_v25  ;;  %v479_v31 = vmul.f32 %v473_v21, %v469_v26  ;;  %v392_v32 = vpop.f32.mrb[4].mxu1 }
 0x2f8   :  { %v563_v33 = vmul.f32 -1.442695, %v474_v28  ;;  %v476_v34 = vmul.f32 %v473_v21, %v464_v29  ;;  %v393_v35 = vadd.f32 %v392_v32, %v302_v17  ;;  %v394_v36 = vpop.f32.mrb[5].mxu1 }
 0x2f9   :  { %v564_v37 = vmul.f32 -1.442695, %v475_v30  ;;  %v568_v38 = vmul.f32 -1.442695, %v479_v31  ;;  %v395_v39 = vadd.f32 %v394_v36, %v306_v18 }
 0x2fa   :  { %696 = vpow2.f32 %v563_v33  ;;  %v565_v40 = vmul.f32 -1.442695, %v476_v34  ;;  %v477_v41 = vmul.f32 %v473_v21, %v393_v35 }
 0x2fb   :  { %698 = vpow2.f32 %v564_v37  ;;  %v478_v42 = vmul.f32 %v473_v21, %v395_v39 }
 0x2fc   :  { %700 = vpow2.f32 %v568_v38  ;;  %v566_v43 = vmul.f32 -1.442695, %v477_v41 }
 0x2fd   :  { %702 = vpow2.f32 %v565_v40  ;;  %v567_v44 = vmul.f32 -1.442695, %v478_v42 }
 0x2fe   :  { %704 = vpow2.f32 %v566_v43 }
 0x2ff   :  { %706 = vpow2.f32 %v567_v44 }
 0x304   :  { %v697_v45 = vpop.eup %696 }
 0x305   :  { %v699_v46 = vpop.eup %698  ;;  %v498_v47 = vadd.f32 1.0, %v697_v45 }
 0x306   :  { %v701_v48 = vpop.eup %700  ;;  %v499_v49 = vadd.f32 1.0, %v699_v46 }
 0x307   :  { %v703_v50 = vpop.eup %702  ;;  %708 = vrcp.f32 %v498_v47  ;;  %v503_v51 = vadd.f32 1.0, %v701_v48 }
 0x308   :  { %v705_v52 = vpop.eup %704  ;;  %710 = vrcp.f32 %v499_v49  ;;  %v500_v53 = vadd.f32 1.0, %v703_v50 }
 0x309   :  { %v707_v54 = vpop.eup %706  ;;  %712 = vrcp.f32 %v503_v51  ;;  %v501_v55 = vadd.f32 1.0, %v705_v52 }
 0x30a   :  { %714 = vrcp.f32 %v500_v53  ;;  %v502_v56 = vadd.f32 1.0, %v707_v54 }
 0x30b   :  { %716 = vrcp.f32 %v501_v55 }
 0x30c   :  { %718 = vrcp.f32 %v502_v56 }
 0x311   :  { %v709_v57 = vpop.eup %708 }
 0x312   :  { %v711_v58 = vpop.eup %710  ;;  %v516_v59 = vmul.f32 %v709_v57, %v387_v22 }
 0x313   :  { %v713_v60 = vpop.eup %712  ;;  %v517_v61 = vmul.f32 %v711_v58, %v389_v25 }
 0x314   :  { %v715_v62 = vpop.eup %714  ;;  %522 = vst [vmem:[#allocation7] sm:$0xff] %v516_v59  ;;  %v521_v63 = vmul.f32 %v713_v60, %v469_v26 }
 0x315   :  { %v717_v0 = vpop.eup %716  ;;  %523 = vst [vmem:[#allocation7 + $0x8] sm:$0xff] %v517_v61  ;;  %v518_v1 = vmul.f32 %v715_v62, %v464_v29 }
 0x316   :  { %v719_v2 = vpop.eup %718  ;;  %528 = vst.msk [vmem:[#allocation7 + $0x28] sm:$0xff] %vm524_vm2, %v521_v63  ;;  %v519_v3 = vmul.f32 %v717_v0, %v393_v35 }
 0x317   :  { %525 = vst.msk [vmem:[#allocation7 + $0x10] sm:$0xff] %vm524_vm2, %v518_v1  ;;  %v520_v4 = vmul.f32 %v719_v2, %v395_v39 }
 0x318   :  { %526 = vst [vmem:[#allocation7 + $0x18] sm:$0xff] %v519_v3 }
 0x319   :  { %527 = vst [vmem:[#allocation7 + $0x20] sm:$0xff] %v520_v4 }
 0x31a   :  { %765 = shalt.err (!%p762_p3)
}
 0x31b   :  { %s766_s24 = scalar_lea.hbm %s953_s8, 768 }
 0x31c   :  { %p767_p4 = scmp.ne.s32.totalorder %s953_s8, %s766_s24  ;;  %p770_p5 = scmp.lt.u32.totalorder %s766_s24, %s953_s8 }
 0x31e   :  { %p772_p6 = pnand %p770_p5, %p767_p4 }
 0x320   :  { %775 = shalt.err (!%p772_p6)
}
 0x321   :  { %s788_s28 = smov 384   ;;  %s789_s29 = smov 24  }
 0x322   :  { %540 = dma.vmem_to_hbm [thread:$0]  %s535_s2, 768, %s953_s8, [#allocation4], %s788_s28, %s788_s28, %s789_s29  }
 0x323   :  { %780 = dma.done.wait [#allocation4], 768  }
 0x324   :  { %781 = vsyncadd [#allocation4], 4294966528 }
 0x325   :  { %544 = vsyncpa [#allocation3], 1 }
 0x326   :  { %545 = vsyncpa [#allocation4], 1 }
 0x327   :  { %546 = vsyncpa [#allocation5], 1 }

</bundles_post_ra>
